<compile_context>
chip_gen: v7x
topology: tpu7x:2x2x1
jax: 0.10.0
libtpu: 0.0.40
codegen_flags: <defaults>
</compile_context>

<pallas_src>
import jax
import jax.numpy as jnp
from jax.experimental import pallas as pl
from jax.experimental.pallas import tpu as pltpu

# ----------------------------- hyperparameters -------------------------------
B = 2            # molecules in batch
N = 8            # padded atoms per molecule
ATOM_FDIM = 32   # atom feature size
HIDDEN = 32      # args.hidden_size
DEPTH = 3        # args.depth (message passing steps)
FFN_HIDDEN = 32  # args.ffn_hidden_size
NUM_TASKS = 1    # args.num_tasks  (classification -> sigmoid at eval)
OUT_PAD = 128    # lane-dense padded output width (sliced back to NUM_TASKS)

BN = B * N       # flattened atom rows


# ------------------------- fused MPN + readout + FFN kernel -------------------
def fused_kernel(x_ref, a_ref, r_ref,
                 wi_ref, bi_ref, wh_ref, woa_ref, wom_ref, bo_ref,
                 w1_ref, b1_ref, w2p_ref, b2p_ref,
                 out_ref):
    x = x_ref[...]                    # (B*N, F)  flattened atom features
    A = a_ref[...]                    # (B*N, B*N) block-diagonal adjacency

    # ---- MPN encoder ----
    inp = jnp.dot(x, wi_ref[...], preferred_element_type=jnp.float32) + bi_ref[...]
    msg = jnp.maximum(inp, 0.0)       # ReLU

    # depth-1 message passing updates (static unroll, DEPTH is small & fixed)
    for _ in range(DEPTH - 1):
        agg = jnp.dot(A, msg, preferred_element_type=jnp.float32)
        msg = jnp.maximum(
            inp + jnp.dot(agg, wh_ref[...], preferred_element_type=jnp.float32),
            0.0)

    a_msg = jnp.dot(A, msg, preferred_element_type=jnp.float32)
    # W_o applied to concat([f_atoms, a_msg]) == split into two matmuls
    atom_h = jnp.maximum(
        jnp.dot(x, woa_ref[...], preferred_element_type=jnp.float32)
        + jnp.dot(a_msg, wom_ref[...], preferred_element_type=jnp.float32)
        + bo_ref[...],
        0.0)                          # (B*N, H)

    # ---- readout: mean over each molecule's atoms via readout matrix ----
    mol = jnp.dot(r_ref[...], atom_h, preferred_element_type=jnp.float32)   # (B, H)

    # ---- FFN head (dropout = identity at eval) + sigmoid ----
    h1 = jnp.maximum(
        jnp.dot(mol, w1_ref[...], preferred_element_type=jnp.float32) + b1_ref[...],
        0.0)
    y = jnp.dot(h1, w2p_ref[...], preferred_element_type=jnp.float32) + b2p_ref[...]
    out_ref[...] = jax.nn.sigmoid(y).astype(out_ref.dtype)   # (B, OUT_PAD) lane-dense


def _full(shape):
    """BlockSpec covering the full array (single grid step)."""
    return pl.BlockSpec(shape, lambda i: tuple(0 for _ in shape))


def molecule_model_forward(f_atoms, adj, params):
    """f_atoms: (B, N, F), adj: (B, N, N) -> predictions: (B, NUM_TASKS)."""
    # host-side layout plumbing (free under jit): flatten batch, block-diag adjacency,
    # readout matrix, lane-dense padded final linear.
    x_flat = f_atoms.reshape(BN, ATOM_FDIM)

    eye_b = jnp.eye(B, dtype=adj.dtype)
    a_bd = jnp.einsum("bc,bij->bicj", eye_b, adj).reshape(BN, BN)

    rows = jnp.arange(B, dtype=jnp.int32)[:, None]
    cols = jnp.arange(BN, dtype=jnp.int32)[None, :]
    readout = jnp.where((cols // N) == rows, 1.0 / N, 0.0).astype(jnp.float32)  # (B, B*N)

    w2p = jnp.zeros((FFN_HIDDEN, OUT_PAD), jnp.float32).at[:, :NUM_TASKS].set(params["w2"])
    b2p = jnp.zeros((1, OUT_PAD), jnp.float32).at[:, :NUM_TASKS].set(params["b2"])

    out_padded = pl.pallas_call(
        fused_kernel,
        out_shape=jax.ShapeDtypeStruct((B, OUT_PAD), jnp.float32),
        grid=(1,),
        in_specs=[
            _full((BN, ATOM_FDIM)),          # x_flat
            _full((BN, BN)),                 # block-diagonal adjacency
            _full((B, BN)),                  # readout matrix
            _full((ATOM_FDIM, HIDDEN)),      # wi
            _full((1, HIDDEN)),              # bi
            _full((HIDDEN, HIDDEN)),         # wh
            _full((ATOM_FDIM, HIDDEN)),      # woa
            _full((HIDDEN, HIDDEN)),         # wom
            _full((1, HIDDEN)),              # bo
            _full((HIDDEN, FFN_HIDDEN)),     # w1
            _full((1, FFN_HIDDEN)),          # b1
            _full((FFN_HIDDEN, OUT_PAD)),    # w2 (lane-padded)
            _full((1, OUT_PAD)),             # b2 (lane-padded)
        ],
        out_specs=_full((B, OUT_PAD)),
        compiler_params=pltpu.CompilerParams(
            dimension_semantics=("arbitrary",)),
    )(x_flat, a_bd, readout,
      params["wi"], params["bi"], params["wh"],
      params["woa"], params["wom"], params["bo"],
      params["w1"], params["b1"], w2p, b2p)

    return out_padded[:, :NUM_TASKS]


molecule_model_forward = jax.jit(molecule_model_forward)


# ------------------------------ parameters -----------------------------------
def init_params(key):
    """Deterministic synthetic weights (xavier-ish scale, zero biases); stored [in, out]."""
    ks = jax.random.split(key, 6)
    scale = 0.1
    return {
        # MPN encoder
        "wi": scale * jax.random.normal(ks[0], (ATOM_FDIM, HIDDEN), jnp.float32),
        "bi": jnp.zeros((1, HIDDEN), jnp.float32),
        "wh": scale * jax.random.normal(ks[1], (HIDDEN, HIDDEN), jnp.float32),
        "woa": scale * jax.random.normal(ks[2], (ATOM_FDIM, HIDDEN), jnp.float32),
        "wom": scale * jax.random.normal(ks[3], (HIDDEN, HIDDEN), jnp.float32),
        "bo": jnp.zeros((1, HIDDEN), jnp.float32),
        # FFN
        "w1": scale * jax.random.normal(ks[4], (HIDDEN, FFN_HIDDEN), jnp.float32),
        "b1": jnp.zeros((1, FFN_HIDDEN), jnp.float32),
        "w2": scale * jax.random.normal(ks[5], (FFN_HIDDEN, NUM_TASKS), jnp.float32),
        "b2": jnp.zeros((1, NUM_TASKS), jnp.float32),
    }


if __name__ == "__main__":
    key = jax.random.PRNGKey(0)
    k_feat, k_adj, k_param = jax.random.split(key, 3)

    # synthetic batch of padded molecular graphs
    f_atoms = jax.random.normal(k_feat, (B, N, ATOM_FDIM), jnp.float32)
    # symmetric 0/1 adjacency without self-loops
    raw = jax.random.uniform(k_adj, (B, N, N))
    adj = (raw + jnp.swapaxes(raw, 1, 2) > 1.0).astype(jnp.float32)
    adj = adj * (1.0 - jnp.eye(N, dtype=jnp.float32))

    params = init_params(k_param)

    out = molecule_model_forward(f_atoms, adj, params)
    out = jax.block_until_ready(out)
    assert out.shape == (B, NUM_TASKS)
    assert bool(jnp.all((out >= 0.0) & (out <= 1.0)))  # sigmoid output range
    print("KERNEL_OK")
</pallas_src>

<mosaic_0001>
module attributes {stable_mosaic.version = 11 : i64} {
  func.func @fused_kernel(%arg0: i32, %arg1: memref<16x32xf32, #tpu.memory_space<vmem>>, %arg2: memref<16x16xf32, #tpu.memory_space<vmem>>, %arg3: memref<2x16xf32, #tpu.memory_space<vmem>>, %arg4: memref<32x32xf32, #tpu.memory_space<vmem>>, %arg5: memref<1x32xf32, #tpu.memory_space<vmem>>, %arg6: memref<32x32xf32, #tpu.memory_space<vmem>>, %arg7: memref<32x32xf32, #tpu.memory_space<vmem>>, %arg8: memref<32x32xf32, #tpu.memory_space<vmem>>, %arg9: memref<1x32xf32, #tpu.memory_space<vmem>>, %arg10: memref<32x32xf32, #tpu.memory_space<vmem>>, %arg11: memref<1x32xf32, #tpu.memory_space<vmem>>, %arg12: memref<32x128xf32, #tpu.memory_space<vmem>>, %arg13: memref<1x128xf32, #tpu.memory_space<vmem>>, %arg14: memref<2x128xf32, #tpu.memory_space<vmem>>) attributes {dimension_semantics = [#tpu.dimension_semantics<arbitrary>], iteration_bounds = array<i64: 1>, scalar_prefetch = 0 : i64, scratch_operands = 0 : i64, tpu.core_type = #tpu.core_type<tc>, window_params = [{pipeline_mode = #tpu.pipeline_mode<synchronous>, transform_indices = @transform_0, window_bounds = array<i64: 16, 32>}, {pipeline_mode = #tpu.pipeline_mode<synchronous>, transform_indices = @transform_1, window_bounds = array<i64: 16, 16>}, {pipeline_mode = #tpu.pipeline_mode<synchronous>, transform_indices = @transform_2, window_bounds = array<i64: 2, 16>}, {pipeline_mode = #tpu.pipeline_mode<synchronous>, transform_indices = @transform_3, window_bounds = array<i64: 32, 32>}, {pipeline_mode = #tpu.pipeline_mode<synchronous>, transform_indices = @transform_4, window_bounds = array<i64: 1, 32>}, {pipeline_mode = #tpu.pipeline_mode<synchronous>, transform_indices = @transform_5, window_bounds = array<i64: 32, 32>}, {pipeline_mode = #tpu.pipeline_mode<synchronous>, transform_indices = @transform_6, window_bounds = array<i64: 32, 32>}, {pipeline_mode = #tpu.pipeline_mode<synchronous>, transform_indices = @transform_7, window_bounds = array<i64: 32, 32>}, {pipeline_mode = #tpu.pipeline_mode<synchronous>, transform_indices = @transform_8, window_bounds = array<i64: 1, 32>}, {pipeline_mode = #tpu.pipeline_mode<synchronous>, transform_indices = @transform_9, window_bounds = array<i64: 32, 32>}, {pipeline_mode = #tpu.pipeline_mode<synchronous>, transform_indices = @transform_10, window_bounds = array<i64: 1, 32>}, {pipeline_mode = #tpu.pipeline_mode<synchronous>, transform_indices = @transform_11, window_bounds = array<i64: 32, 128>}, {pipeline_mode = #tpu.pipeline_mode<synchronous>, transform_indices = @transform_12, window_bounds = array<i64: 1, 128>}, {pipeline_mode = #tpu.pipeline_mode<synchronous>, transform_indices = @transform_13, window_bounds = array<i64: 2, 128>}]} {
    %c0 = arith.constant 0 : index
    %c0_0 = arith.constant 0 : index
    %0 = vector.load %arg1[%c0, %c0_0] : memref<16x32xf32, #tpu.memory_space<vmem>>, vector<16x32xf32>
    %c0_1 = arith.constant 0 : index
    %c0_2 = arith.constant 0 : index
    %1 = vector.load %arg2[%c0_1, %c0_2] : memref<16x16xf32, #tpu.memory_space<vmem>>, vector<16x16xf32>
    %c0_3 = arith.constant 0 : index
    %c0_4 = arith.constant 0 : index
    %2 = vector.load %arg4[%c0_3, %c0_4] : memref<32x32xf32, #tpu.memory_space<vmem>>, vector<32x32xf32>
    %cst = arith.constant dense<0.000000e+00> : vector<16x32xf32>
    %3 = tpu.matmul %0, %2, %cst {dimension_numbers = #tpu.dot_dimension_numbers<[1], [0], [0], [1], [0, 0, 1, 1], [], []>} : vector<16x32xf32>, vector<32x32xf32>, vector<16x32xf32> -> vector<16x32xf32>
    %c0_5 = arith.constant 0 : index
    %c0_6 = arith.constant 0 : index
    %4 = vector.load %arg5[%c0_5, %c0_6] : memref<1x32xf32, #tpu.memory_space<vmem>>, vector<1x32xf32>
    %5 = vector.broadcast %4 : vector<1x32xf32> to vector<16x32xf32>
    %6 = arith.addf %3, %5 : vector<16x32xf32>
    %cst_7 = arith.constant 0.000000e+00 : f32
    %7 = vector.broadcast %cst_7 : f32 to vector<16x32xf32>
    %8 = arith.maximumf %6, %7 : vector<16x32xf32>
    %cst_8 = arith.constant dense<0.000000e+00> : vector<16x32xf32>
    %9 = tpu.matmul %1, %8, %cst_8 {dimension_numbers = #tpu.dot_dimension_numbers<[1], [0], [0], [1], [0, 0, 1, 1], [], []>} : vector<16x16xf32>, vector<16x32xf32>, vector<16x32xf32> -> vector<16x32xf32>
    %c0_9 = arith.constant 0 : index
    %c0_10 = arith.constant 0 : index
    %10 = vector.load %arg6[%c0_9, %c0_10] : memref<32x32xf32, #tpu.memory_space<vmem>>, vector<32x32xf32>
    %cst_11 = arith.constant dense<0.000000e+00> : vector<16x32xf32>
    %11 = tpu.matmul %9, %10, %cst_11 {dimension_numbers = #tpu.dot_dimension_numbers<[1], [0], [0], [1], [0, 0, 1, 1], [], []>} : vector<16x32xf32>, vector<32x32xf32>, vector<16x32xf32> -> vector<16x32xf32>
    %12 = arith.addf %6, %11 : vector<16x32xf32>
    %cst_12 = arith.constant 0.000000e+00 : f32
    %13 = vector.broadcast %cst_12 : f32 to vector<16x32xf32>
    %14 = arith.maximumf %12, %13 : vector<16x32xf32>
    %cst_13 = arith.constant dense<0.000000e+00> : vector<16x32xf32>
    %15 = tpu.matmul %1, %14, %cst_13 {dimension_numbers = #tpu.dot_dimension_numbers<[1], [0], [0], [1], [0, 0, 1, 1], [], []>} : vector<16x16xf32>, vector<16x32xf32>, vector<16x32xf32> -> vector<16x32xf32>
    %c0_14 = arith.constant 0 : index
    %c0_15 = arith.constant 0 : index
    %16 = vector.load %arg6[%c0_14, %c0_15] : memref<32x32xf32, #tpu.memory_space<vmem>>, vector<32x32xf32>
    %cst_16 = arith.constant dense<0.000000e+00> : vector<16x32xf32>
    %17 = tpu.matmul %15, %16, %cst_16 {dimension_numbers = #tpu.dot_dimension_numbers<[1], [0], [0], [1], [0, 0, 1, 1], [], []>} : vector<16x32xf32>, vector<32x32xf32>, vector<16x32xf32> -> vector<16x32xf32>
    %18 = arith.addf %6, %17 : vector<16x32xf32>
    %cst_17 = arith.constant 0.000000e+00 : f32
    %19 = vector.broadcast %cst_17 : f32 to vector<16x32xf32>
    %20 = arith.maximumf %18, %19 : vector<16x32xf32>
    %cst_18 = arith.constant dense<0.000000e+00> : vector<16x32xf32>
    %21 = tpu.matmul %1, %20, %cst_18 {dimension_numbers = #tpu.dot_dimension_numbers<[1], [0], [0], [1], [0, 0, 1, 1], [], []>} : vector<16x16xf32>, vector<16x32xf32>, vector<16x32xf32> -> vector<16x32xf32>
    %c0_19 = arith.constant 0 : index
    %c0_20 = arith.constant 0 : index
    %22 = vector.load %arg7[%c0_19, %c0_20] : memref<32x32xf32, #tpu.memory_space<vmem>>, vector<32x32xf32>
    %cst_21 = arith.constant dense<0.000000e+00> : vector<16x32xf32>
    %23 = tpu.matmul %0, %22, %cst_21 {dimension_numbers = #tpu.dot_dimension_numbers<[1], [0], [0], [1], [0, 0, 1, 1], [], []>} : vector<16x32xf32>, vector<32x32xf32>, vector<16x32xf32> -> vector<16x32xf32>
    %c0_22 = arith.constant 0 : index
    %c0_23 = arith.constant 0 : index
    %24 = vector.load %arg8[%c0_22, %c0_23] : memref<32x32xf32, #tpu.memory_space<vmem>>, vector<32x32xf32>
    %cst_24 = arith.constant dense<0.000000e+00> : vector<16x32xf32>
    %25 = tpu.matmul %21, %24, %cst_24 {dimension_numbers = #tpu.dot_dimension_numbers<[1], [0], [0], [1], [0, 0, 1, 1], [], []>} : vector<16x32xf32>, vector<32x32xf32>, vector<16x32xf32> -> vector<16x32xf32>
    %26 = arith.addf %23, %25 : vector<16x32xf32>
    %c0_25 = arith.constant 0 : index
    %c0_26 = arith.constant 0 : index
    %27 = vector.load %arg9[%c0_25, %c0_26] : memref<1x32xf32, #tpu.memory_space<vmem>>, vector<1x32xf32>
    %28 = vector.broadcast %27 : vector<1x32xf32> to vector<16x32xf32>
    %29 = arith.addf %26, %28 : vector<16x32xf32>
    %cst_27 = arith.constant 0.000000e+00 : f32
    %30 = vector.broadcast %cst_27 : f32 to vector<16x32xf32>
    %31 = arith.maximumf %29, %30 : vector<16x32xf32>
    %c0_28 = arith.constant 0 : index
    %c0_29 = arith.constant 0 : index
    %32 = vector.load %arg3[%c0_28, %c0_29] : memref<2x16xf32, #tpu.memory_space<vmem>>, vector<2x16xf32>
    %cst_30 = arith.constant dense<0.000000e+00> : vector<2x32xf32>
    %33 = tpu.matmul %32, %31, %cst_30 {dimension_numbers = #tpu.dot_dimension_numbers<[1], [0], [0], [1], [0, 0, 1, 1], [], []>} : vector<2x16xf32>, vector<16x32xf32>, vector<2x32xf32> -> vector<2x32xf32>
    %c0_31 = arith.constant 0 : index
    %c0_32 = arith.constant 0 : index
    %34 = vector.load %arg10[%c0_31, %c0_32] : memref<32x32xf32, #tpu.memory_space<vmem>>, vector<32x32xf32>
    %cst_33 = arith.constant dense<0.000000e+00> : vector<2x32xf32>
    %35 = tpu.matmul %33, %34, %cst_33 {dimension_numbers = #tpu.dot_dimension_numbers<[1], [0], [0], [1], [0, 0, 1, 1], [], []>} : vector<2x32xf32>, vector<32x32xf32>, vector<2x32xf32> -> vector<2x32xf32>
    %c0_34 = arith.constant 0 : index
    %c0_35 = arith.constant 0 : index
    %36 = vector.load %arg11[%c0_34, %c0_35] : memref<1x32xf32, #tpu.memory_space<vmem>>, vector<1x32xf32>
    %37 = vector.broadcast %36 : vector<1x32xf32> to vector<2x32xf32>
    %38 = arith.addf %35, %37 : vector<2x32xf32>
    %cst_36 = arith.constant 0.000000e+00 : f32
    %39 = vector.broadcast %cst_36 : f32 to vector<2x32xf32>
    %40 = arith.maximumf %38, %39 : vector<2x32xf32>
    %c0_37 = arith.constant 0 : index
    %c0_38 = arith.constant 0 : index
    %41 = vector.load %arg12[%c0_37, %c0_38] : memref<32x128xf32, #tpu.memory_space<vmem>>, vector<32x128xf32>
    %cst_39 = arith.constant dense<0.000000e+00> : vector<2x128xf32>
    %42 = tpu.matmul %40, %41, %cst_39 {dimension_numbers = #tpu.dot_dimension_numbers<[1], [0], [0], [1], [0, 0, 1, 1], [], []>} : vector<2x32xf32>, vector<32x128xf32>, vector<2x128xf32> -> vector<2x128xf32>
    %c0_40 = arith.constant 0 : index
    %c0_41 = arith.constant 0 : index
    %43 = vector.load %arg13[%c0_40, %c0_41] : memref<1x128xf32, #tpu.memory_space<vmem>>, vector<1x128xf32>
    %44 = vector.broadcast %43 : vector<1x128xf32> to vector<2x128xf32>
    %45 = arith.addf %42, %44 : vector<2x128xf32>
    %46 = arith.negf %45 : vector<2x128xf32>
    %47 = math.exp %46 : vector<2x128xf32>
    %cst_42 = arith.constant 1.000000e+00 : f32
    %48 = vector.broadcast %cst_42 : f32 to vector<2x128xf32>
    %49 = arith.addf %48, %47 : vector<2x128xf32>
    %50 = arith.divf %48, %49 : vector<2x128xf32>
    %c0_43 = arith.constant 0 : index
    %c0_44 = arith.constant 0 : index
    %51 = vector.load %arg14[%c0_43, %c0_44] : memref<2x128xf32, #tpu.memory_space<vmem>>, vector<2x128xf32>
    tpu.vector_store %arg14[%c0_43, %c0_44], %50 {strides = array<i32>} : memref<2x128xf32, #tpu.memory_space<vmem>>, vector<2x128xf32>,
    return
  }
  func.func @transform_0(%arg0: i32) -> (i32, i32) {
    %c0_i32 = arith.constant 0 : i32
    %c0_i32_0 = arith.constant 0 : i32
    %c0_i32_1 = arith.constant 0 : i32
    return %c0_i32, %c0_i32_0 : i32, i32
  }
  func.func @transform_1(%arg0: i32) -> (i32, i32) {
    %c0_i32 = arith.constant 0 : i32
    %c0_i32_0 = arith.constant 0 : i32
    %c0_i32_1 = arith.constant 0 : i32
    return %c0_i32, %c0_i32_0 : i32, i32
  }
  func.func @transform_2(%arg0: i32) -> (i32, i32) {
    %c0_i32 = arith.constant 0 : i32
    %c0_i32_0 = arith.constant 0 : i32
    %c0_i32_1 = arith.constant 0 : i32
    return %c0_i32, %c0_i32_0 : i32, i32
  }
  func.func @transform_3(%arg0: i32) -> (i32, i32) {
    %c0_i32 = arith.constant 0 : i32
    %c0_i32_0 = arith.constant 0 : i32
    %c0_i32_1 = arith.constant 0 : i32
    return %c0_i32, %c0_i32_0 : i32, i32
  }
  func.func @transform_4(%arg0: i32) -> (i32, i32) {
    %c0_i32 = arith.constant 0 : i32
    %c0_i32_0 = arith.constant 0 : i32
    %c0_i32_1 = arith.constant 0 : i32
    return %c0_i32, %c0_i32_0 : i32, i32
  }
  func.func @transform_5(%arg0: i32) -> (i32, i32) {
    %c0_i32 = arith.constant 0 : i32
    %c0_i32_0 = arith.constant 0 : i32
    %c0_i32_1 = arith.constant 0 : i32
    return %c0_i32, %c0_i32_0 : i32, i32
  }
  func.func @transform_6(%arg0: i32) -> (i32, i32) {
    %c0_i32 = arith.constant 0 : i32
    %c0_i32_0 = arith.constant 0 : i32
    %c0_i32_1 = arith.constant 0 : i32
    return %c0_i32, %c0_i32_0 : i32, i32
  }
  func.func @transform_7(%arg0: i32) -> (i32, i32) {
    %c0_i32 = arith.constant 0 : i32
    %c0_i32_0 = arith.constant 0 : i32
    %c0_i32_1 = arith.constant 0 : i32
    return %c0_i32, %c0_i32_0 : i32, i32
  }
  func.func @transform_8(%arg0: i32) -> (i32, i32) {
    %c0_i32 = arith.constant 0 : i32
    %c0_i32_0 = arith.constant 0 : i32
    %c0_i32_1 = arith.constant 0 : i32
    return %c0_i32, %c0_i32_0 : i32, i32
  }
  func.func @transform_9(%arg0: i32) -> (i32, i32) {
    %c0_i32 = arith.constant 0 : i32
    %c0_i32_0 = arith.constant 0 : i32
    %c0_i32_1 = arith.constant 0 : i32
    return %c0_i32, %c0_i32_0 : i32, i32
  }
  func.func @transform_10(%arg0: i32) -> (i32, i32) {
    %c0_i32 = arith.constant 0 : i32
    %c0_i32_0 = arith.constant 0 : i32
    %c0_i32_1 = arith.constant 0 : i32
    return %c0_i32, %c0_i32_0 : i32, i32
  }
  func.func @transform_11(%arg0: i32) -> (i32, i32) {
    %c0_i32 = arith.constant 0 : i32
    %c0_i32_0 = arith.constant 0 : i32
    %c0_i32_1 = arith.constant 0 : i32
    return %c0_i32, %c0_i32_0 : i32, i32
  }
  func.func @transform_12(%arg0: i32) -> (i32, i32) {
    %c0_i32 = arith.constant 0 : i32
    %c0_i32_0 = arith.constant 0 : i32
    %c0_i32_1 = arith.constant 0 : i32
    return %c0_i32, %c0_i32_0 : i32, i32
  }
  func.func @transform_13(%arg0: i32) -> (i32, i32) {
    %c0_i32 = arith.constant 0 : i32
    %c0_i32_0 = arith.constant 0 : i32
    %c0_i32_1 = arith.constant 0 : i32
    return %c0_i32, %c0_i32_0 : i32, i32
  }
}

</mosaic_0001>

<bundles_post_ra>
// kernel: molecule_model_forward.1
= control target key start
LH: loop header
LB: loop body
LE: loop exit
PB: predicated region body
PF: predicated region fallthrough
CT: control target
= control target key end

     0   :  { %vm59_vm0 = vcmask 261120   ;;  %vm143_vm1 = vcmask 130048   ;;  %v1238_v56 = vmov 0.0|0.0   ;;  %vm1239_vm2 = vmmov 0   ;;  %s1443_s3 = inlined_call_operand.vmem [shape: f32[32,32], index: 3, kind: input, shape index: {}]   ;;  %s1444_s0 = inlined_call_operand.vmem [shape: f32[16,32], index: 0, kind: input, shape index: {}]   ;;  %s1445_s1 = inlined_call_operand.vmem [shape: f32[16,16], index: 1, kind: input, shape index: {}]   ;;  %s1446_s5 = inlined_call_operand.vmem [shape: f32[32,32], index: 5, kind: input, shape index: {}]   ;;  %s1447_s4 = inlined_call_operand.vmem [shape: f32[1,32], index: 4, kind: input, shape index: {}]   ;;  %s1448_s7 = inlined_call_operand.vmem [shape: f32[32,32], index: 7, kind: input, shape index: {}]   ;;  %s1449_s6 = inlined_call_operand.vmem [shape: f32[32,32], index: 6, kind: input, shape index: {}]   ;;  %s1450_s8 = inlined_call_operand.vmem [shape: f32[1,32], index: 8, kind: input, shape index: {}]   ;;  %s1451_s9 = inlined_call_operand.vmem [shape: f32[32,32], index: 9, kind: input, shape index: {}]   ;;  %s1452_s2 = inlined_call_operand.vmem [shape: f32[2,16], index: 2, kind: input, shape index: {}]   ;;  %s1453_s11 = inlined_call_operand.vmem [shape: f32[32,128], index: 11, kind: input, shape index: {}]   ;;  %s1454_s10 = inlined_call_operand.vmem [shape: f32[1,32], index: 10, kind: input, shape index: {}]   ;;  %s1455_s12 = inlined_call_operand.vmem [shape: f32[1,128], index: 12, kind: input, shape index: {}]   ;;  %s1456_s13 = inlined_call_operand.vmem [shape: f32[2,128], index: 13, kind: output, shape index: {}]  }
   0x1   :  { %v48_v0 = vld [vmem:[%s1443_s3] sm:$0xff]  ;;  %v49_v1 = vld [vmem:[%s1443_s3 + $0x8] sm:$0xff]  ;;  %v50_v2 = vld [vmem:[%s1443_s3 + $0x10] sm:$0xff]  ;;  %v1240_v57 = vmov 0.0  }
   0x2   :  { %v1162_v3 = vpack.c.bf16 %v49_v1, %v48_v0  ;;  %v51_v4 = vld [vmem:[%s1443_s3 + $0x18] sm:$0xff]  ;;  %v1326_v5 = vld [vmem:[%s1444_s0] sm:$0xff]  ;;  %v1333_v7 = vld [vmem:[%s1444_s0 + $0x8] sm:$0xff] }
   0x3   :  { %v1166_v6 = vpack.c.bf16 %v51_v4, %v50_v2  ;;  %1065 = vmatprep.mubr.msk.f32.mxu0 %vm59_vm0, %v1326_v5  ;;  %v46_v8 = vld [vmem:[%s1445_s1] sm:$0xff]  ;;  %v226_v10 = vld [vmem:[%s1446_s5 + $0x8] sm:$0xff]  ;;  %v227_v11 = vld [vmem:[%s1446_s5 + $0x10] sm:$0xff] }
   0x4   :  { %1163 = vmatprep.subr.bf16.mxu0 %v1162_v3  ;;  %1072 = vmatprep.mubr.msk.f32.mxu1 %vm143_vm1, %v46_v8  ;;  %v225_v9 = vld [vmem:[%s1446_s5] sm:$0xff]  ;;  %v228_v13 = vld [vmem:[%s1446_s5 + $0x18] sm:$0xff]  ;;  %v47_v23 = vld [vmem:[%s1445_s1 + $0x8] sm:$0xff] }
   0x5   :  { %1165 = vmatpush3.bf16.msra.mxu0 %v1162_v3  ;;  %v1174_v12 = vpack.c.bf16 %v226_v10, %v225_v9  ;;  %v1178_v14 = vpack.c.bf16 %v228_v13, %v227_v11  ;;  %v978_v15 = vld [vmem:[%s1447_s4] ss:$0 sm:$0xff]  ;;  %v554_v41 = vld [vmem:[%s1448_s7 + $0x8] sm:$0xff]  ;;  %v555_v45 = vld [vmem:[%s1448_s7 + $0x10] sm:$0xff] }
   0x6   :  { %1167 = vmatprep.subr.bf16.mxu0 %v1166_v6  ;;  %v553_v40 = vld [vmem:[%s1448_s7] sm:$0xff]  ;;  %v556_v46 = vld [vmem:[%s1448_s7 + $0x18] sm:$0xff]  ;;  %v550_v49 = vld [vmem:[%s1449_s6 + $0x8] sm:$0xff] }
   0x7   :  { %v1198_v44 = vpack.c.bf16 %v554_v41, %v553_v40  ;;  %v1202_v47 = vpack.c.bf16 %v556_v46, %v555_v45  ;;  %v549_v48 = vld [vmem:[%s1449_s6] sm:$0xff]  ;;  %v551_v51 = vld [vmem:[%s1449_s6 + $0x10] sm:$0xff]  ;;  %v552_v52 = vld [vmem:[%s1449_s6 + $0x18] sm:$0xff] }
   0x8   :  { %v1206_v50 = vpack.c.bf16 %v550_v49, %v549_v48  ;;  %v1210_v55 = vpack.c.bf16 %v552_v52, %v551_v51  ;;  %v995_v58 = vld [vmem:[%s1450_s8] ss:$0 sm:$0xff]  ;;  %v799_v2 = vld [vmem:[%s1451_s9 + $0x8] sm:$0xff] }
   0x9   :  { %1169 = vmatpush3.bf16.msra.mxu0 %v1166_v6  ;;  %v798_v1 = vld [vmem:[%s1451_s9] sm:$0xff]  ;;  %v800_v6 = vld [vmem:[%s1451_s9 + $0x10] sm:$0xff]  ;;  %v884_v10 = vld [vmem:[%s1453_s11 + $0x8] sm:$0xff] }
   0xa   :  { %1187 = vmatprep.subr.bf16.mxu0 %v1174_v12  ;;  %v724_v4 = vld [vmem:[%s1452_s2] sm:$0x3] }
   0xb   :  { %v883_v9 = vld [vmem:[%s1453_s11] sm:$0xff] }
   0xc   :  { %1066 = vmatmul.mubr.msk.f32.vlgmr.msra.gmra.mrb[0].mxu0 %vm59_vm0, %v1333_v7  ;;  %v1224_v11 = vpack.c.bf16 %v884_v10, %v883_v9 }
   0xd   :  { %1189 = vmatpush3.bf16.msra.mxu0 %v1174_v12 }
   0xe   :  { %1191 = vmatprep.subr.bf16.mxu0 %v1178_v14 }
  0x11   :  { %1193 = vmatpush3.bf16.msra.mxu0 %v1178_v14 }
  0x12   :  { %1214 = vmatprep.subr.bf16.mxu0 %v1238_v56 }
  0xdf   :  { %v1067_v16 = vpop.f32.mrb[0].mxu0 }
  0xe0   :  { %v138_v17 = vadd.f32 %v1067_v16, %v978_v15  ;;  %v132_v18 = vpop.f32.mrb[1].mxu0 }
  0xe1   :  { %v133_v19 = vadd.f32 %v978_v15, %v132_v18  ;;  %v886_v15 = vld [vmem:[%s1453_s11 + $0x18] sm:$0xff] }
  0xe2   :  { %v142_v20 = vmax.f32 %v138_v17, 0.0 }
  0xe3   :  { %v141_v21 = vmax.f32 %v133_v19, 0.0 }
  0xe5   :  { %v1170_v22 = vpack.c.bf16 %v142_v20, %v141_v21 }
  0xe7   :  { %1171 = vmatprep.subr.bf16.mxu1 %v1170_v22 }
  0xe8   :  { %1173 = vmatpush3.bf16.msra.mxu1 %v1170_v22  ;;  %v999_v22 = vld [vmem:[%s1455_s12] ss:$0 sm:$0xff] }
  0xe9   :  { %1175 = vmatprep.subr.bf16.mxu1 %v1174_v12 }
  0xeb   :  { %1073 = vmatmul.mubr.msk.f32.vlgmr.msra.gmra.mrb[0].mxu1 %vm143_vm1, %v47_v23 }
  0xec   :  { %1177 = vmatpush3.bf16.msra.mxu1 %v1174_v12 }
  0xed   :  { %1179 = vmatprep.subr.bf16.mxu1 %v1178_v14 }
  0xf0   :  { %1181 = vmatpush3.bf16.msra.mxu1 %v1178_v14  ;;  %v885_v14 = vld [vmem:[%s1453_s11 + $0x10] sm:$0xff] }
  0xf1   :  { %v1227_v16 = vpack.c.bf16 %v886_v15, %v885_v14 }
 0x1be   :  { %v1074_v24 = vpop.f32.mrb[0].mxu1 }
 0x1bf   :  { %v216_v25 = vpop.f32.mrb[1].mxu1 }
 0x1c0   :  { %1083 = vmatprep.mubr.msk.f32.mxu1 %vm59_vm0, %v216_v25 }
 0x1c1   :  { %1084 = vmatmul.mubr.msk.f32.vlgmr.msra.gmra.mrb[2].mxu1 %vm59_vm0, %v1074_v24 }
 0x1c2   :  { %1090 = vmatprep.mubr.msk.f32.mxu1 %vm143_vm1, %v46_v8 }
 0x294   :  { %v1085_v26 = vpop.f32.mrb[2].mxu1 }
 0x295   :  { %v311_v27 = vadd.f32 %v1085_v26, %v138_v17  ;;  %v301_v28 = vpop.f32.mrb[3].mxu1 }
 0x296   :  { %v310_v29 = vadd.f32 %v301_v28, %v133_v19 }
 0x297   :  { %v313_v30 = vmax.f32 %v311_v27, 0.0 }
 0x298   :  { %v312_v31 = vmax.f32 %v310_v29, 0.0 }
 0x29a   :  { %v1182_v32 = vpack.c.bf16 %v313_v30, %v312_v31 }
 0x29c   :  { %1183 = vmatprep.subr.bf16.mxu1 %v1182_v32 }
 0x29d   :  { %1185 = vmatpush3.bf16.msra.mxu1 %v1182_v32 }
 0x2a0   :  { %1091 = vmatmul.mubr.msk.f32.vlgmr.msra.gmra.mrb[4].mxu1 %vm143_vm1, %v47_v23 }
 0x2a1   :  { %1108 = vmatprep.mubr.msk.f32.mxu1 %vm143_vm1, %v46_v8 }
 0x373   :  { %v1092_v33 = vpop.f32.mrb[4].mxu1 }
 0x374   :  { %v380_v34 = vpop.f32.mrb[5].mxu1 }
 0x375   :  { %1101 = vmatprep.mubr.msk.f32.mxu0 %vm59_vm0, %v380_v34 }
 0x376   :  { %1102 = vmatmul.mubr.msk.f32.vlgmr.msra.gmra.mrb[2].mxu0 %vm59_vm0, %v1092_v33 }
 0x377   :  { %1137 = vmatprep.mubr.msk.f32.mxu0 %vm1239_vm2, %v1240_v57 }
 0x449   :  { %v1103_v35 = vpop.f32.mrb[2].mxu0 }
 0x44a   :  { %v471_v36 = vadd.f32 %v1103_v35, %v138_v17  ;;  %v461_v37 = vpop.f32.mrb[3].mxu0  ;;  %v997_v17 = vld [vmem:[%s1454_s10] ss:$0 sm:$0xff] }
 0x44b   :  { %v470_v38 = vadd.f32 %v461_v37, %v133_v19 }
 0x44c   :  { %v473_v39 = vmax.f32 %v471_v36, 0.0 }
 0x44d   :  { %v472_v42 = vmax.f32 %v470_v38, 0.0 }
 0x44f   :  { %v1194_v43 = vpack.c.bf16 %v473_v39, %v472_v42 }
 0x451   :  { %1195 = vmatprep.subr.bf16.mxu1 %v1194_v43 }
 0x452   :  { %1197 = vmatpush3.bf16.msra.mxu1 %v1194_v43 }
 0x453   :  { %1199 = vmatprep.subr.bf16.mxu1 %v1198_v44 }
 0x455   :  { %1109 = vmatmul.mubr.msk.f32.vlgmr.msra.gmra.mrb[6].mxu1 %vm143_vm1, %v47_v23 }
 0x456   :  { %1201 = vmatpush3.bf16.msra.mxu1 %v1198_v44 }
 0x457   :  { %1203 = vmatprep.subr.bf16.mxu1 %v1202_v47 }
 0x45a   :  { %1205 = vmatpush3.bf16.msra.mxu1 %v1202_v47 }
 0x45b   :  { %1207 = vmatprep.subr.bf16.mxu1 %v1206_v50 }
 0x528   :  { %v1110_v53 = vpop.f32.mrb[6].mxu1 }
 0x529   :  { %v540_v54 = vpop.f32.mrb[7].mxu1 }
 0x52a   :  { %1119 = vmatprep.mubr.msk.f32.mxu1 %vm59_vm0, %v540_v54 }
 0x52b   :  { %1120 = vmatmul.mubr.msk.f32.vlgmr.msra.gmra.mrb[8].mxu1 %vm59_vm0, %v1110_v53 }
 0x52c   :  { %1209 = vmatpush3.bf16.msra.mxu1 %v1206_v50  ;;  %1130 = vmatprep.mubr.msk.f32.mxu1 %vm59_vm0, %v1326_v5  ;;  %v1218_v5 = vpack.c.bf16 %v799_v2, %v798_v1 }
 0x52d   :  { %1211 = vmatprep.subr.bf16.mxu1 %v1210_v55 }
 0x530   :  { %1213 = vmatpush3.bf16.msra.mxu1 %v1210_v55 }
 0x533   :  { %1131 = vmatmul.mubr.msk.f32.vlgmr.msra.gmra.mrb[8].mxu1 %vm59_vm0, %v1333_v7  ;;  %v801_v7 = vld [vmem:[%s1451_s9 + $0x18] sm:$0xff] }
 0x534   :  { %v1221_v8 = vpack.c.bf16 %v801_v7, %v800_v6 }
 0x606   :  { %v1132_v59 = vpop.f32.mrb[8].mxu1 }
 0x607   :  { %v721_v60 = vadd.f32 %v1132_v59, %v995_v58  ;;  %v704_v61 = vpop.f32.mrb[9].mxu1 }
 0x608   :  { %v720_v62 = vadd.f32 %v995_v58, %v704_v61 }
 0x609   :  { %v723_v63 = vmax.f32 %v721_v60, 0.0 }
 0x60a   :  { %v722_v0 = vmax.f32 %v720_v62, 0.0 }
 0x60c   :  { %v1215_v3 = vpack.c.bf16 %v723_v63, %v722_v0 }
 0x60e   :  { %1216 = vmatpush3.bf16.msra.mxu0 %v1215_v3 }
 0x60f   :  { %1217 = vmatprep.subr.bf16.mxu0 %v1238_v56 }
 0x611   :  { %1138 = vmatmul.mubr.msk.f32.vlgmr.msra.gmra.mrb[4].mxu0 %vm143_vm1, %v724_v4 }
 0x612   :  { %1219 = vmatpush3.bf16.msra.mxu0 %v1218_v5  ;;  %1148 = vmatprep.mubr.msk.f32.mxu0 %vm1239_vm2, %v1240_v57 }
 0x613   :  { %1220 = vmatprep.subr.bf16.mxu0 %v1238_v56 }
 0x616   :  { %1222 = vmatpush3.bf16.msra.mxu0 %v1221_v8 }
 0x617   :  { %1223 = vmatprep.subr.bf16.mxu0 %v1238_v56 }
 0x6e4   :  { %v794_v12 = vpop.f32.mrb[4].mxu0 }
 0x6e5   :  { %v1139_v13 = vpop.f32.mrb[5].mxu0  ;;  %1149 = vmatmul.mubr.msk.f32.vlgmr.msra.gmra.mrb[6].mxu0 %vm59_vm0, %v794_v12 }
 0x6e6   :  { %1225 = vmatpush3.bf16.msra.mxu0 %v1224_v11  ;;  %1159 = vmatprep.mubr.msk.f32.mxu0 %vm1239_vm2, %v1240_v57 }
 0x6e7   :  { %1226 = vmatprep.subr.bf16.mxu0 %v1238_v56 }
 0x6ea   :  { %1228 = vmatpush3.bf16.msra.mxu0 %v1227_v16 }
 0x7b8   :  { %v878_v18 = vpop.f32.mrb[6].mxu0 }
 0x7b9   :  { %v879_v19 = vadd.f32 %v997_v17, %v878_v18  ;;  %v1150_v20 = vpop.f32.mrb[7].mxu0 }
 0x7bb   :  { %v882_v21 = vmax.f32 %v879_v19, 0.0 }
 0x7bd   :  { %1160 = vmatmul.mubr.msk.f32.vlgmr.msra.gmra.mrb[8].mxu0 %vm59_vm0, %v882_v21 }
 0x890   :  { %v963_v23 = vpop.f32.mrb[8].mxu0 }
 0x891   :  { %v964_v24 = vadd.f32 %v999_v22, %v963_v23  ;;  %v1161_v25 = vpop.f32.mrb[9].mxu0 }
 0x893   :  { %v1001_v26 = vmul.f32 -1.442695, %v964_v24 }
 0x895   :  { %1234 = vpow2.f32 %v1001_v26 }
 0x89f   :  { %v1235_v27 = vpop.eup %1234 }
 0x8a0   :  { %v970_v28 = vadd.f32 1.0, %v1235_v27 }
 0x8a2   :  { %1236 = vrcp.f32 %v970_v28 }
 0x8ac   :  { %v1237_v29 = vpop.eup %1236 }
 0x8ad   :  { %973 = vst [vmem:[%s1456_s13] sm:$0x3] %v1237_v29 }

</bundles_post_ra>
